<compile_context>
chip_gen: v6e
topology: v6e:2x2x1
jax: 0.10.0
libtpu: 0.0.40
codegen_flags: <defaults>
</compile_context>

<pallas_src>
import jax
import jax.numpy as jnp
from jax.experimental import pallas as pl
from jax.experimental.pallas import tpu as pltpu

_FP = 8           # narrow feature pad (5 real features + 1 ones-lane + 2 zero)
_ONES_COL = 5     # column of x carrying the constant 1.0 (drives the biases)
_MAX_TB = 2048    # batch tile (rows)


def _round_up(n, m):
    return ((n + m - 1) // m) * m


def _nested_model_kernel(x_ref, w_ref, o_ref):
    x = x_ref[...]                                   # (TB, 8)  cols: 5 feats, 1.0, 0, 0
    w1a = w_ref[0]                                   # (8, 8)   sub1.fc + bias row + ones passthrough
    wfa = w_ref[1]                                   # (8, 8)   fused sub2.fc1/fc2/fc3 + bias row

    # sub1: Linear(5,5) (+bias via ones-lane) + ReLU.  Ones-lane (col 5) is
    # propagated through w1a[5,5] = 1 and stays positive through the ReLU.
    h = jnp.dot(x, w1a, preferred_element_type=jnp.float32)
    h = jnp.maximum(h, 0.0)

    # fused sub2.fc1 -> sub2.fc2 -> fc3 (+fused bias via ones-lane)
    o_ref[...] = jnp.dot(h, wfa, preferred_element_type=jnp.float32).astype(o_ref.dtype)


def pack_params(params):
    """Fuse the three post-ReLU affine layers, fold biases into weight rows,
    and pad features to the narrow 8-wide layout."""
    w1, b1 = params["w1"], params["b1"]
    wf = params["w2"] @ params["w3"] @ params["w4"]
    bf = (params["b2"] @ params["w3"] + params["b3"]) @ params["w4"] + params["b4"]

    d_in, d_mid = w1.shape            # (5, 5)
    d_out = wf.shape[1]               # 5

    w1a = jnp.zeros((_FP, _FP), jnp.float32)
    w1a = w1a.at[:d_in, :d_mid].set(w1)
    w1a = w1a.at[_ONES_COL, :d_mid].set(b1.reshape(-1))   # bias row
    w1a = w1a.at[_ONES_COL, _ONES_COL].set(1.0)           # keep ones-lane alive

    wfa = jnp.zeros((_FP, _FP), jnp.float32)
    wfa = wfa.at[:d_mid, :d_out].set(wf)
    wfa = wfa.at[_ONES_COL, :d_out].set(bf.reshape(-1))   # fused bias row

    return jnp.stack([w1a, wfa])                           # (2, 8, 8)


def nested_model_forward(x, params):
    """x: (batch, 5) float32.  params: dict of transposed weights + biases."""
    batch, feat_in = x.shape
    out_dim = params["w4"].shape[1]

    w_packed = pack_params(params)

    # Pad batch only to a multiple of 8 (sublane); grid may have a partial
    # last block (OOB reads are row-independent garbage, OOB writes dropped).
    batch_p = _round_up(batch, 8)
    tb = min(_MAX_TB, batch_p)
    # Give the ("parallel",) batch axis >= 2 steps for v7x megacore when
    # there is enough work to be worth sharding.
    if tb == batch_p and batch_p >= 1024:
        tb = _round_up(pl.cdiv(batch_p, 2), 8)
    grid = (pl.cdiv(batch_p, tb),)

    # Narrow HBM-side input: real features in cols 0..4, 1.0 in col 5
    # (drives the folded biases), zeros elsewhere / in padded rows.
    x_p = jnp.zeros((batch_p, _FP), jnp.float32)
    x_p = x_p.at[:batch, :feat_in].set(x)
    x_p = x_p.at[:batch, _ONES_COL].set(1.0)

    x_map = lambda i: (i, 0)
    w_map = lambda i: (0, 0, 0)   # weights resident across the batch axis

    cost = pl.CostEstimate(
        flops=2 * 2 * batch_p * _FP * _FP,   # two (TB,8)x(8,8) matmuls over the grid
        transcendentals=0,
        bytes_accessed=(2 * batch_p * _FP + w_packed.size) * 4,
    )

    out_p = pl.pallas_call(
        _nested_model_kernel,
        out_shape=jax.ShapeDtypeStruct((batch_p, _FP), jnp.float32),
        grid=grid,
        in_specs=[
            pl.BlockSpec((tb, _FP), x_map),
            pl.BlockSpec((2, _FP, _FP), w_map),
        ],
        out_specs=pl.BlockSpec((tb, _FP), x_map),
        compiler_params=pltpu.CompilerParams(
            dimension_semantics=("parallel",),
        ),
        cost_estimate=cost,
    )(x_p, w_packed)

    return out_p[:batch, :out_dim]


def init_params(key):
    """Deterministic init mimicking torch.nn.Linear default (uniform +/- 1/sqrt(fan_in)).

    Returns weights already transposed to (in_features, out_features).
    """
    def linear(key, fan_in, fan_out):
        kw, kb = jax.random.split(key)
        bound = 1.0 / jnp.sqrt(float(fan_in))
        w = jax.random.uniform(kw, (fan_in, fan_out), jnp.float32, -bound, bound)
        b = jax.random.uniform(kb, (1, fan_out), jnp.float32, -bound, bound)
        return w, b

    k1, k2, k3, k4 = jax.random.split(key, 4)
    w1, b1 = linear(k1, 5, 5)   # sub1.fc
    w2, b2 = linear(k2, 5, 8)   # sub2.fc1
    w3, b3 = linear(k3, 8, 5)   # sub2.fc2
    w4, b4 = linear(k4, 5, 5)   # fc3
    return dict(w1=w1, b1=b1, w2=w2, b2=b2, w3=w3, b3=b3, w4=w4, b4=b4)


def reference_forward(x, p):
    """Unfused, unpadded float reference matching the PyTorch module."""
    h = jnp.maximum(x @ p["w1"] + p["b1"], 0.0)
    h = h @ p["w2"] + p["b2"]
    h = h @ p["w3"] + p["b3"]
    h = h @ p["w4"] + p["b4"]
    return h


if __name__ == "__main__":
    key = jax.random.PRNGKey(0)
    kx, kp = jax.random.split(key)

    batch = 8
    x = jax.random.normal(kx, (batch, 5), jnp.float32)
    params = init_params(kp)

    out = nested_model_forward(x, params)
    out = jax.block_until_ready(out)

    ref = reference_forward(x, params)
    assert out.shape == (batch, 5)
    assert jnp.allclose(out, ref, atol=1e-5, rtol=1e-5), (
        float(jnp.max(jnp.abs(out - ref))))

    print("KERNEL_OK")
</pallas_src>

<mosaic_0001>
module attributes {stable_mosaic.version = 11 : i64} {
  func.func @_nested_model_kernel(%arg0: i32, %arg1: memref<8x8xf32, #tpu.memory_space<vmem>>, %arg2: memref<2x8x8xf32, #tpu.memory_space<vmem>>, %arg3: memref<8x8xf32, #tpu.memory_space<vmem>>) attributes {dimension_semantics = [#tpu.dimension_semantics<parallel>], iteration_bounds = array<i64: 1>, scalar_prefetch = 0 : i64, scratch_operands = 0 : i64, tpu.core_type = #tpu.core_type<tc>, window_params = [{transform_indices = @transform_0, window_bounds = array<i64: 8, 8>}, {pipeline_mode = #tpu.pipeline_mode<synchronous>, transform_indices = @transform_1, window_bounds = array<i64: 2, 8, 8>}, {transform_indices = @transform_2, window_bounds = array<i64: 8, 8>}]} {
    %c0 = arith.constant 0 : index
    %c0_0 = arith.constant 0 : index
    %0 = vector.load %arg1[%c0, %c0_0] : memref<8x8xf32, #tpu.memory_space<vmem>>, vector<8x8xf32>
    %c0_1 = arith.constant 0 : index
    %c0_2 = arith.constant 0 : index
    %c0_3 = arith.constant 0 : index
    %1 = vector.load %arg2[%c0_1, %c0_2, %c0_3] : memref<2x8x8xf32, #tpu.memory_space<vmem>>, vector<1x8x8xf32>
    %2 = vector.shape_cast %1 : vector<1x8x8xf32> to vector<8x8xf32>
    %c1 = arith.constant 1 : index
    %c0_4 = arith.constant 0 : index
    %c0_5 = arith.constant 0 : index
    %3 = vector.load %arg2[%c1, %c0_4, %c0_5] : memref<2x8x8xf32, #tpu.memory_space<vmem>>, vector<1x8x8xf32>
    %4 = vector.shape_cast %3 : vector<1x8x8xf32> to vector<8x8xf32>
    %cst = arith.constant dense<0.000000e+00> : vector<8x8xf32>
    %5 = tpu.matmul %0, %2, %cst {dimension_numbers = #tpu.dot_dimension_numbers<[1], [0], [0], [1], [0, 0, 1, 1], [], []>} : vector<8x8xf32>, vector<8x8xf32>, vector<8x8xf32> -> vector<8x8xf32>
    %cst_6 = arith.constant 0.000000e+00 : f32
    %6 = vector.broadcast %cst_6 : f32 to vector<8x8xf32>
    %7 = arith.maximumf %5, %6 : vector<8x8xf32>
    %cst_7 = arith.constant dense<0.000000e+00> : vector<8x8xf32>
    %8 = tpu.matmul %7, %4, %cst_7 {dimension_numbers = #tpu.dot_dimension_numbers<[1], [0], [0], [1], [0, 0, 1, 1], [], []>} : vector<8x8xf32>, vector<8x8xf32>, vector<8x8xf32> -> vector<8x8xf32>
    %c0_8 = arith.constant 0 : index
    %c0_9 = arith.constant 0 : index
    %9 = vector.load %arg3[%c0_8, %c0_9] : memref<8x8xf32, #tpu.memory_space<vmem>>, vector<8x8xf32>
    tpu.vector_store %arg3[%c0_8, %c0_9], %8 {strides = array<i32>} : memref<8x8xf32, #tpu.memory_space<vmem>>, vector<8x8xf32>,
    return
  }
  func.func @transform_0(%arg0: i32) -> (i32, i32) {
    %c0_i32 = arith.constant 0 : i32
    %c0_i32_0 = arith.constant 0 : i32
    return %arg0, %c0_i32 : i32, i32
  }
  func.func @transform_1(%arg0: i32) -> (i32, i32, i32) {
    %c0_i32 = arith.constant 0 : i32
    %c0_i32_0 = arith.constant 0 : i32
    %c0_i32_1 = arith.constant 0 : i32
    %c0_i32_2 = arith.constant 0 : i32
    return %c0_i32, %c0_i32_0, %c0_i32_1 : i32, i32, i32
  }
  func.func @transform_2(%arg0: i32) -> (i32, i32) {
    %c0_i32 = arith.constant 0 : i32
    %c0_i32_0 = arith.constant 0 : i32
    return %arg0, %c0_i32 : i32, i32
  }
}

</mosaic_0001>

<bundles_post_ra>
// kernel: tpu_custom_call.1
= control target key start
LH: loop header
LB: loop body
LE: loop exit
PB: predicated region body
PF: predicated region fallthrough
CT: control target
= control target key end

     0   :  { %7 = vsyncpa [#allocation3], 0  ;;  %s327_s0 = inlined_call_operand.hbm [shape: f32[8,8], index: 0, kind: input, shape index: {}]   ;;  %s328_s1 = inlined_call_operand.hbm [shape: f32[2,8,8], index: 1, kind: input, shape index: {}]   ;;  %s329_s2 = inlined_call_operand.hbm [shape: f32[8,8], index: 2, kind: output, shape index: {}]  }
   0x1   :  { %8 = vsyncpa [#allocation6], 0 }
   0x2   :  { %9 = vsyncpa [#allocation4], 0  ;;  %s296_s9 = smov [#allocation2]   ;;  %s297_s11 = smov [#allocation5]  }
   0x3   :  { %s16_s10 = sshll.u32 %s296_s9, 4  ;;  %s25_s12 = sshll.u32 %s297_s11, 4  ;;  %s17_s10 = int_to_ptr.vmem [resolvable:$true] %s16_s10  ;;  %s26_s12 = int_to_ptr.vmem [resolvable:$true] %s25_s12 }
   0x4   :  { %s238_s13 = scalar_lea.vmem %s17_s10, 128  ;;  %p243_p1 = scmp.lt.s32.totalorder %s17_s10, %s17_s10 }
   0x5   :  { %p239_p0 = scmp.ne.s32.totalorder %s17_s10, %s238_s13  ;;  %p244_p2 = scmp.lt.s32.totalorder %s238_s13, %s238_s13 }
   0x7   :  { %p245_p3 = por %p244_p2, %p243_p1 }
   0x9   :  { %p246_p4 = pnand %p245_p3, %p239_p0 }
   0xb   :  { %249 = shalt.err (!%p246_p4)
}
   0xc   :  { %19 = dma.hbm_to_vmem [thread:$0]  %s327_s0, 128, %s17_s10, [#allocation3]  }
   0xd   :  { %s258_s16 = scalar_lea.vmem %s26_s12, 256  ;;  %p263_p6 = scmp.lt.s32.totalorder %s26_s12, %s26_s12 }
   0xe   :  { %p259_p5 = scmp.ne.s32.totalorder %s26_s12, %s258_s16  ;;  %p264_p7 = scmp.lt.s32.totalorder %s258_s16, %s258_s16 }
  0x10   :  { %p265_p8 = por %p264_p7, %p263_p6 }
  0x12   :  { %p266_p9 = pnand %p265_p8, %p259_p5 }
  0x14   :  { %269 = shalt.err (!%p266_p9)
}
  0x15   :  { %s298_s17 = smov 128   ;;  %s299_s18 = smov 8  }
  0x16   :  { %31 = dma.hbm_to_vmem [thread:$0]  %s328_s1, 256, %s26_s12, [#allocation6], %s298_s17, %s298_s17, %s299_s18  }
  0x17   :  { %290 = dma.done.wait [#allocation3], 128  }
  0x18   :  { %291 = vsyncadd [#allocation3], 4294967168 }
  0x19   :  { %292 = dma.done.wait [#allocation6], 256  }
  0x1a   :  { %293 = vsyncadd [#allocation6], 4294967040  ;;  %v300_v0 = vmov 0.0   ;;  %vm301_vm0 = vmmov 0   ;;  %vm42_vm1 = vcmask 64512   ;;  %v39_v1 = vld [vmem:[#allocation5] sm:$0xff] }
  0x1b   :  { %213 = vmatprep.subr.mxu0 %v300_v0  ;;  %215 = vmatprep.mubr.msk.f32.mxu0 %vm301_vm0, %v300_v0  ;;  %v38_v2 = vld [vmem:[#allocation2] sm:$0xff]  ;;  %v41_v3 = vld [vmem:[#allocation5 + $0x8] sm:$0xff]  ;;  %s302_s0 = smov [#allocation7]  }
  0x1c   :  { %218 = vmatprep.subr.mxu1 %v300_v0  ;;  %220 = vmatprep.mubr.msk.f32.mxu1 %vm301_vm0, %v300_v0  ;;  %s197_s1 = sshll.u32 %s302_s0, 4  ;;  %s198_s1 = int_to_ptr.vmem [resolvable:$true] %s197_s1 }
  0x1d   :  { %214 = vmatpush3.msra.mxu0 %v39_v1  ;;  %219 = vmatpush3.msra.mxu1 %v41_v3  ;;  %s270_s21 = scalar_lea.vmem %s198_s1, 128  ;;  %p275_p11 = scmp.lt.s32.totalorder %s198_s1, %s198_s1 }
  0x1e   :  { %216 = vmatmul.mubr.msk.f32.vlgmr.msra.gmra.mxu0 %vm42_vm1, %v38_v2  ;;  %p271_p10 = scmp.ne.s32.totalorder %s198_s1, %s270_s21  ;;  %p276_p12 = scmp.lt.s32.totalorder %s270_s21, %s270_s21 }
  0x20   :  { %p277_p13 = por %p276_p12, %p275_p11 }
  0x22   :  { %p278_p0 = pnand %p277_p13, %p271_p10 }
  0xde   :  { %v112_v4 = vpop.f32.mrf.mxu0 }
  0xdf   :  { %v116_v5 = vmax.f32 %v112_v4, 0.0 }
  0xe0   :  { %v217_v6 = vpop.f32.mrf.mxu0 }
  0xe1   :  { %221 = vmatmul.mubr.msk.f32.vlgmr.msra.gmra.mxu1 %vm42_vm1, %v116_v5 }
 0x1a1   :  { %v186_v7 = vpop.f32.mrf.mxu1 }
 0x1a2   :  { %190 = vst.msk [vmem:[#allocation7] sm:$0xff] %vm42_vm1, %v186_v7 }
 0x1a3   :  { %v222_v8 = vpop.f32.mrf.mxu1 }
 0x1a4   :  { %281 = shalt.err (!%p278_p0)
}
 0x1a5   :  { %200 = dma.vmem_to_hbm [thread:$0]  %s198_s1, 128, %s329_s2, [#allocation4]  }
 0x1a6   :  { %294 = dma.done.wait [#allocation4], 128  }
 0x1a7   :  { %295 = vsyncadd [#allocation4], 4294967168 }
 0x1a8   :  { %204 = vsyncpa [#allocation3], 1 }
 0x1a9   :  { %205 = vsyncpa [#allocation6], 1 }
 0x1aa   :  { %206 = vsyncpa [#allocation4], 1 }

</bundles_post_ra>
